<compile_context>
chip_gen: v6e
topology: v6e:2x2x1
jax: 0.10.0
libtpu: 0.0.40
codegen_flags: <defaults>
</compile_context>

<pallas_src>
import functools

import jax
import jax.numpy as jnp
from jax.experimental import pallas as pl
from jax.experimental.pallas import tpu as pltpu


_VMEM = pl.BlockSpec(memory_space=pltpu.MemorySpace.VMEM)
_LANE = 128      # TPU lane width
_SUBLANE = 8     # f32 sublane count


def _round_up(x, m):
    return ((x + m - 1) // m) * m


# ----------------------------------------------------------------------------
# Fused decoder-step kernel (one pallas_call for the whole forward)
# ----------------------------------------------------------------------------
def _make_decoder_kernel(num_layers, hidden_size, vocab, batch_pad, hid_pad):
    H = hidden_size
    H2 = 2 * H
    n_lw = num_layers * 4   # 4 packed weight arrays per layer

    def kernel(ids_ref, hidden_ref, emb_ref, *rest):
        layer_refs = rest[:n_lw]
        fc_w_ref, fc_b_ref, out_ref, hidden_out_ref = rest[n_lw:n_lw + 4]

        # ---- embedding lookup as a one-hot matmul (vocab is tiny) ----------
        ids = ids_ref[...]                                       # (Bp, 1) int32
        lane = jax.lax.broadcasted_iota(jnp.int32, (batch_pad, vocab), 1)
        onehot = (lane == ids).astype(jnp.float32)               # (Bp, V)
        x = jnp.dot(onehot, emb_ref[...],
                    preferred_element_type=jnp.float32)          # (Bp, E) f32
        # nn.Dropout(p): identity in eval mode.
        # TODO(synk): training-mode dropout (random masking) not implemented.

        hid_all = hidden_ref[...]                                # (Bp, HID_PAD)
        new_h = []

        for l in range(num_layers):
            W_ih, W_hh, b_i, b_hn = layer_refs[4 * l:4 * l + 4]
            # Current layer's hidden, both directions lane-concatenated.
            h_cat = hid_all[:, l * H2:(l + 1) * H2]              # (Bp, 2H) f32

            # Fused input->gates for BOTH directions: one (d_in, 6H) dot.
            # Column layout [r_f r_b | z_f z_b | n_f n_b]; bias pre-summed
            # (b_ih + b_hh) for r/z, b_ih only for n.
            gi = jnp.dot(x.astype(jnp.bfloat16), W_ih[...],
                         preferred_element_type=jnp.float32) + b_i[...]
            # Fused hidden->gates: block-diagonal (2H, 6H) dot.
            gh = jnp.dot(h_cat.astype(jnp.bfloat16), W_hh[...],
                         preferred_element_type=jnp.float32)

            r = jax.nn.sigmoid(gi[:, :H2] + gh[:, :H2])
            z = jax.nn.sigmoid(gi[:, H2:2 * H2] + gh[:, H2:2 * H2])
            n = jnp.tanh(gi[:, 2 * H2:] + r * (gh[:, 2 * H2:] + b_hn[...]))
            h_new = (1.0 - z) * n + z * h_cat                    # (Bp, 2H) [fwd|bwd]

            new_h.append(h_new)
            x = h_new
            # GRU inter-layer dropout: identity in eval mode.

        # ---- final Linear; output tile is a full 128-lane (lane-dense) slab -
        out_ref[...] = jnp.dot(x.astype(jnp.bfloat16), fc_w_ref[...],
                               preferred_element_type=jnp.float32) + fc_b_ref[...]

        # ---- single lane-dense store of the whole new hidden slab -----------
        hid_new = jnp.concatenate(new_h, axis=1)                 # (Bp, L*2H)
        if hid_pad > num_layers * H2:
            hid_new = jnp.concatenate(
                [hid_new,
                 jnp.zeros((batch_pad, hid_pad - num_layers * H2), jnp.float32)],
                axis=1)
        hidden_out_ref[...] = hid_new                            # in-place (aliased)

    return kernel


# ----------------------------------------------------------------------------
# Parameter construction (deterministic; weights stored pre-packed / fused)
# ----------------------------------------------------------------------------
def init_decoder_params(key, input_size, output_size, hidden_size, num_layers,
                        embedding_dim):
    H = hidden_size
    out_pad = _round_up(output_size, _LANE)

    keys = jax.random.split(key, 1 + num_layers * 8 + 2)
    kit = iter(keys)

    def rnd(shape, scale=0.1):
        return (scale * jax.random.normal(next(kit), shape)).astype(jnp.float32)

    params = {
        "embedding": rnd((input_size, embedding_dim)),   # (V, E) f32 (tiny)
        "layers": [],
    }

    for layer in range(num_layers):
        d_in = embedding_dim if layer == 0 else 2 * H

        wi, wh, bi, bh = [], [], [], []
        for _d in range(2):  # fwd, bwd
            wi.append(rnd((d_in, 3 * H)))   # (d_in, 3H), gate cols [r | z | n]
            wh.append(rnd((H, 3 * H)))
            bi.append(rnd((1, 3 * H)))
            bh.append(rnd((1, 3 * H)))

        zeros_hh = jnp.zeros((H, H), jnp.float32)
        w_ih_cols, w_hh_cols, b_cols = [], [], []
        for g in range(3):                  # r, z, n
            sl = slice(g * H, (g + 1) * H)
            # input-side: both directions side by side on the column axis
            w_ih_cols += [wi[0][:, sl], wi[1][:, sl]]
            # hidden-side: block diagonal (fwd rows -> fwd cols, bwd -> bwd)
            col_fwd = jnp.concatenate([wh[0][:, sl], zeros_hh], axis=0)  # (2H,H)
            col_bwd = jnp.concatenate([zeros_hh, wh[1][:, sl]], axis=0)  # (2H,H)
            w_hh_cols.append(jnp.concatenate([col_fwd, col_bwd], axis=1))
            # biases: pre-sum b_ih+b_hh for r/z; keep b_ih only for n
            if g < 2:
                b_cols += [bi[0][:, sl] + bh[0][:, sl],
                           bi[1][:, sl] + bh[1][:, sl]]
            else:
                b_cols += [bi[0][:, sl], bi[1][:, sl]]

        params["layers"].append({
            "W_ih": jnp.concatenate(w_ih_cols, axis=1).astype(jnp.bfloat16),  # (d_in, 6H)
            "W_hh": jnp.concatenate(w_hh_cols, axis=1).astype(jnp.bfloat16),  # (2H, 6H)
            "b_i": jnp.concatenate(b_cols, axis=1),                           # (1, 6H) f32
            "b_hn": jnp.concatenate([bh[0][:, 2 * H:], bh[1][:, 2 * H:]],
                                    axis=1),                                  # (1, 2H) f32
        })

    # Linear(2H -> output): transposed, lane-padded to 128 columns, bf16.
    fc_w = rnd((2 * H, output_size))
    fc_b = rnd((1, output_size))
    params["fc_w"] = jnp.pad(
        fc_w, ((0, 0), (0, out_pad - output_size))).astype(jnp.bfloat16)
    params["fc_b"] = jnp.pad(fc_b, ((0, 0), (0, out_pad - output_size)))
    return params


# ----------------------------------------------------------------------------
# Hidden-state layout helpers (run ONCE outside the decode loop)
# ----------------------------------------------------------------------------
def pack_hidden(hidden, batch_pad, hid_pad):
    """(num_layers*2, B, H) -> lane-dense (Bp, HID_PAD) slab, [l0_f l0_b l1_f ...]."""
    L2, B, H = hidden.shape
    h = jnp.transpose(hidden, (1, 0, 2)).reshape(B, L2 * H).astype(jnp.float32)
    return jnp.pad(h, ((0, batch_pad - B), (0, hid_pad - L2 * H)))


def unpack_hidden(hidden_packed, num_layers, batch, hidden_size):
    """(Bp, HID_PAD) slab -> (num_layers*2, B, H)."""
    h = hidden_packed[:batch, :num_layers * 2 * hidden_size]
    h = h.reshape(batch, num_layers * 2, hidden_size)
    return jnp.transpose(h, (1, 0, 2))


# ----------------------------------------------------------------------------
# Decoder forward (eval-mode semantics of the PyTorch module, single step)
# ----------------------------------------------------------------------------
@functools.partial(jax.jit, static_argnames=("output_size",))
def decoder_forward(params, input_ids, hidden_packed, *, output_size):
    """
    input_ids:     (B,) int32
    hidden_packed: (Bp, HID_PAD) float32 kernel-native hidden slab (carried state)
    returns:       out (B, output_size), new hidden slab (Bp, HID_PAD)
    """
    B = input_ids.shape[0]
    Bp, hid_pad = hidden_packed.shape
    num_layers = len(params["layers"])
    H = params["fc_w"].shape[0] // 2
    vocab = params["embedding"].shape[0]
    out_pad = params["fc_b"].shape[1]

    ids_p = jnp.pad(input_ids.astype(jnp.int32), (0, Bp - B)).reshape(Bp, 1)

    args = [ids_p, hidden_packed, params["embedding"]]
    for lp in params["layers"]:
        args += [lp["W_ih"], lp["W_hh"], lp["b_i"], lp["b_hn"]]
    args += [params["fc_w"], params["fc_b"]]

    kernel = _make_decoder_kernel(num_layers, H, vocab, Bp, hid_pad)

    out_p, hidden_packed_new = pl.pallas_call(
        kernel,
        out_shape=(
            jax.ShapeDtypeStruct((Bp, out_pad), jnp.float32),
            jax.ShapeDtypeStruct((Bp, hid_pad), jnp.float32),
        ),
        in_specs=[_VMEM] * len(args),
        out_specs=(_VMEM, _VMEM),
        input_output_aliases={1: 1},   # hidden slab (input 1) reused for output 1
    )(*args)

    return out_p[:B, :output_size], hidden_packed_new


# ----------------------------------------------------------------------------
if __name__ == "__main__":
    # Small, forward-consistent shapes.
    input_size = 16      # vocab
    output_size = 10
    hidden_size = 32
    num_layers = 2
    embedding_dim = 32
    batch = 2

    key = jax.random.PRNGKey(0)
    k_params, k_ids, k_hidden = jax.random.split(key, 3)

    params = init_decoder_params(
        k_params, input_size, output_size, hidden_size, num_layers, embedding_dim
    )

    input_ids = jax.random.randint(k_ids, (batch,), 0, input_size, dtype=jnp.int32)
    hidden0 = (0.1 * jax.random.normal(
        k_hidden, (num_layers * 2, batch, hidden_size))).astype(jnp.float32)

    Bp = _round_up(batch, _SUBLANE)
    hid_pad = _round_up(num_layers * 2 * hidden_size, _LANE)

    # Pad / re-layout the hidden state ONCE; it stays in the kernel-native
    # lane-dense layout across decode steps (no per-step pad/slice).
    hidden_packed = pack_hidden(hidden0, Bp, hid_pad)

    ids = input_ids
    out = None
    for _ in range(3):   # short greedy decode loop to exercise carried state
        out, hidden_packed = decoder_forward(
            params, ids, hidden_packed, output_size=output_size)
        ids = (jnp.argmax(out, axis=-1).astype(jnp.int32)) % input_size

    hidden_out = unpack_hidden(hidden_packed, num_layers, batch, hidden_size)
    jax.block_until_ready((out, hidden_out))

    assert out.shape == (batch, output_size)
    assert hidden_out.shape == (num_layers * 2, batch, hidden_size)
    print("KERNEL_OK")
</pallas_src>

<mosaic_0001>
module attributes {stable_mosaic.version = 11 : i64} {
  func.func @kernel(%arg0: memref<8x1xi32, #tpu.memory_space<vmem>>, %arg1: memref<8x128xf32, #tpu.memory_space<vmem>>, %arg2: memref<16x32xf32, #tpu.memory_space<vmem>>, %arg3: memref<32x192xbf16, #tpu.memory_space<vmem>>, %arg4: memref<64x192xbf16, #tpu.memory_space<vmem>>, %arg5: memref<1x192xf32, #tpu.memory_space<vmem>>, %arg6: memref<1x64xf32, #tpu.memory_space<vmem>>, %arg7: memref<64x192xbf16, #tpu.memory_space<vmem>>, %arg8: memref<64x192xbf16, #tpu.memory_space<vmem>>, %arg9: memref<1x192xf32, #tpu.memory_space<vmem>>, %arg10: memref<1x64xf32, #tpu.memory_space<vmem>>, %arg11: memref<64x128xbf16, #tpu.memory_space<vmem>>, %arg12: memref<1x128xf32, #tpu.memory_space<vmem>>, %arg13: memref<8x128xf32, #tpu.memory_space<vmem>>, %arg14: memref<8x128xf32, #tpu.memory_space<vmem>>) attributes {dimension_semantics = [], scalar_prefetch = 0 : i64, scratch_operands = 0 : i64, tpu.core_type = #tpu.core_type<tc>} {
    %c0 = arith.constant 0 : index
    %c0_0 = arith.constant 0 : index
    %0 = vector.load %arg0[%c0, %c0_0] : memref<8x1xi32, #tpu.memory_space<vmem>>, vector<8x1xi32>
    %1 = tpu.iota {dimensions = array<i32: 1>} : vector<8x16xi32>
    %2 = vector.broadcast %0 : vector<8x1xi32> to vector<8x16xi32>
    %3 = arith.cmpi eq, %1, %2 : vector<8x16xi32>
    %4 = arith.extui %3 : vector<8x16xi1> to vector<8x16xi32>
    %5 = arith.sitofp %4 : vector<8x16xi32> to vector<8x16xf32>
    %c0_1 = arith.constant 0 : index
    %c0_2 = arith.constant 0 : index
    %6 = vector.load %arg2[%c0_1, %c0_2] : memref<16x32xf32, #tpu.memory_space<vmem>>, vector<16x32xf32>
    %cst = arith.constant dense<0.000000e+00> : vector<8x32xf32>
    %7 = tpu.matmul %5, %6, %cst {dimension_numbers = #tpu.dot_dimension_numbers<[1], [0], [0], [1], [0, 0, 1, 1], [], []>} : vector<8x16xf32>, vector<16x32xf32>, vector<8x32xf32> -> vector<8x32xf32>
    %c0_3 = arith.constant 0 : index
    %c0_4 = arith.constant 0 : index
    %8 = vector.load %arg1[%c0_3, %c0_4] : memref<8x128xf32, #tpu.memory_space<vmem>>, vector<8x128xf32>
    %9 = vector.extract_strided_slice %8 {offsets = [0, 0], sizes = [8, 64], strides = [1, 1]} : vector<8x128xf32> to vector<8x64xf32>
    %10 = arith.truncf %7 : vector<8x32xf32> to vector<8x32xbf16>
    %c0_5 = arith.constant 0 : index
    %c0_6 = arith.constant 0 : index
    %11 = vector.load %arg3[%c0_5, %c0_6] : memref<32x192xbf16, #tpu.memory_space<vmem>>, vector<32x192xbf16>
    %cst_7 = arith.constant dense<0.000000e+00> : vector<8x192xf32>
    %12 = tpu.matmul %10, %11, %cst_7 {dimension_numbers = #tpu.dot_dimension_numbers<[1], [0], [0], [1], [0, 0, 1, 1], [], []>} : vector<8x32xbf16>, vector<32x192xbf16>, vector<8x192xf32> -> vector<8x192xf32>
    %c0_8 = arith.constant 0 : index
    %c0_9 = arith.constant 0 : index
    %13 = vector.load %arg5[%c0_8, %c0_9] : memref<1x192xf32, #tpu.memory_space<vmem>>, vector<1x192xf32>
    %14 = vector.broadcast %13 : vector<1x192xf32> to vector<8x192xf32>
    %15 = arith.addf %12, %14 : vector<8x192xf32>
    %16 = arith.truncf %9 : vector<8x64xf32> to vector<8x64xbf16>
    %c0_10 = arith.constant 0 : index
    %c0_11 = arith.constant 0 : index
    %17 = vector.load %arg4[%c0_10, %c0_11] : memref<64x192xbf16, #tpu.memory_space<vmem>>, vector<64x192xbf16>
    %cst_12 = arith.constant dense<0.000000e+00> : vector<8x192xf32>
    %18 = tpu.matmul %16, %17, %cst_12 {dimension_numbers = #tpu.dot_dimension_numbers<[1], [0], [0], [1], [0, 0, 1, 1], [], []>} : vector<8x64xbf16>, vector<64x192xbf16>, vector<8x192xf32> -> vector<8x192xf32>
    %19 = vector.extract_strided_slice %15 {offsets = [0, 0], sizes = [8, 64], strides = [1, 1]} : vector<8x192xf32> to vector<8x64xf32>
    %20 = vector.extract_strided_slice %18 {offsets = [0, 0], sizes = [8, 64], strides = [1, 1]} : vector<8x192xf32> to vector<8x64xf32>
    %21 = arith.addf %19, %20 : vector<8x64xf32>
    %22 = arith.negf %21 : vector<8x64xf32>
    %23 = math.exp %22 : vector<8x64xf32>
    %cst_13 = arith.constant 1.000000e+00 : f32
    %24 = vector.broadcast %cst_13 : f32 to vector<8x64xf32>
    %25 = arith.addf %24, %23 : vector<8x64xf32>
    %26 = arith.divf %24, %25 : vector<8x64xf32>
    %27 = vector.extract_strided_slice %15 {offsets = [0, 64], sizes = [8, 64], strides = [1, 1]} : vector<8x192xf32> to vector<8x64xf32>
    %28 = vector.extract_strided_slice %18 {offsets = [0, 64], sizes = [8, 64], strides = [1, 1]} : vector<8x192xf32> to vector<8x64xf32>
    %29 = arith.addf %27, %28 : vector<8x64xf32>
    %30 = arith.negf %29 : vector<8x64xf32>
    %31 = math.exp %30 : vector<8x64xf32>
    %cst_14 = arith.constant 1.000000e+00 : f32
    %32 = vector.broadcast %cst_14 : f32 to vector<8x64xf32>
    %33 = arith.addf %32, %31 : vector<8x64xf32>
    %34 = arith.divf %32, %33 : vector<8x64xf32>
    %35 = vector.extract_strided_slice %15 {offsets = [0, 128], sizes = [8, 64], strides = [1, 1]} : vector<8x192xf32> to vector<8x64xf32>
    %36 = vector.extract_strided_slice %18 {offsets = [0, 128], sizes = [8, 64], strides = [1, 1]} : vector<8x192xf32> to vector<8x64xf32>
    %c0_15 = arith.constant 0 : index
    %c0_16 = arith.constant 0 : index
    %37 = vector.load %arg6[%c0_15, %c0_16] : memref<1x64xf32, #tpu.memory_space<vmem>>, vector<1x64xf32>
    %38 = vector.broadcast %37 : vector<1x64xf32> to vector<8x64xf32>
    %39 = arith.addf %36, %38 : vector<8x64xf32>
    %40 = arith.mulf %26, %39 : vector<8x64xf32>
    %41 = arith.addf %35, %40 : vector<8x64xf32>
    %42 = math.tanh %41 : vector<8x64xf32>
    %cst_17 = arith.constant 1.000000e+00 : f32
    %43 = vector.broadcast %cst_17 : f32 to vector<8x64xf32>
    %44 = arith.subf %43, %34 : vector<8x64xf32>
    %45 = arith.mulf %44, %42 : vector<8x64xf32>
    %46 = arith.mulf %34, %9 : vector<8x64xf32>
    %47 = arith.addf %45, %46 : vector<8x64xf32>
    %48 = vector.extract_strided_slice %8 {offsets = [0, 64], sizes = [8, 64], strides = [1, 1]} : vector<8x128xf32> to vector<8x64xf32>
    %49 = arith.truncf %47 : vector<8x64xf32> to vector<8x64xbf16>
    %c0_18 = arith.constant 0 : index
    %c0_19 = arith.constant 0 : index
    %50 = vector.load %arg7[%c0_18, %c0_19] : memref<64x192xbf16, #tpu.memory_space<vmem>>, vector<64x192xbf16>
    %cst_20 = arith.constant dense<0.000000e+00> : vector<8x192xf32>
    %51 = tpu.matmul %49, %50, %cst_20 {dimension_numbers = #tpu.dot_dimension_numbers<[1], [0], [0], [1], [0, 0, 1, 1], [], []>} : vector<8x64xbf16>, vector<64x192xbf16>, vector<8x192xf32> -> vector<8x192xf32>
    %c0_21 = arith.constant 0 : index
    %c0_22 = arith.constant 0 : index
    %52 = vector.load %arg9[%c0_21, %c0_22] : memref<1x192xf32, #tpu.memory_space<vmem>>, vector<1x192xf32>
    %53 = vector.broadcast %52 : vector<1x192xf32> to vector<8x192xf32>
    %54 = arith.addf %51, %53 : vector<8x192xf32>
    %55 = arith.truncf %48 : vector<8x64xf32> to vector<8x64xbf16>
    %c0_23 = arith.constant 0 : index
    %c0_24 = arith.constant 0 : index
    %56 = vector.load %arg8[%c0_23, %c0_24] : memref<64x192xbf16, #tpu.memory_space<vmem>>, vector<64x192xbf16>
    %cst_25 = arith.constant dense<0.000000e+00> : vector<8x192xf32>
    %57 = tpu.matmul %55, %56, %cst_25 {dimension_numbers = #tpu.dot_dimension_numbers<[1], [0], [0], [1], [0, 0, 1, 1], [], []>} : vector<8x64xbf16>, vector<64x192xbf16>, vector<8x192xf32> -> vector<8x192xf32>
    %58 = vector.extract_strided_slice %54 {offsets = [0, 0], sizes = [8, 64], strides = [1, 1]} : vector<8x192xf32> to vector<8x64xf32>
    %59 = vector.extract_strided_slice %57 {offsets = [0, 0], sizes = [8, 64], strides = [1, 1]} : vector<8x192xf32> to vector<8x64xf32>
    %60 = arith.addf %58, %59 : vector<8x64xf32>
    %61 = arith.negf %60 : vector<8x64xf32>
    %62 = math.exp %61 : vector<8x64xf32>
    %cst_26 = arith.constant 1.000000e+00 : f32
    %63 = vector.broadcast %cst_26 : f32 to vector<8x64xf32>
    %64 = arith.addf %63, %62 : vector<8x64xf32>
    %65 = arith.divf %63, %64 : vector<8x64xf32>
    %66 = vector.extract_strided_slice %54 {offsets = [0, 64], sizes = [8, 64], strides = [1, 1]} : vector<8x192xf32> to vector<8x64xf32>
    %67 = vector.extract_strided_slice %57 {offsets = [0, 64], sizes = [8, 64], strides = [1, 1]} : vector<8x192xf32> to vector<8x64xf32>
    %68 = arith.addf %66, %67 : vector<8x64xf32>
    %69 = arith.negf %68 : vector<8x64xf32>
    %70 = math.exp %69 : vector<8x64xf32>
    %cst_27 = arith.constant 1.000000e+00 : f32
    %71 = vector.broadcast %cst_27 : f32 to vector<8x64xf32>
    %72 = arith.addf %71, %70 : vector<8x64xf32>
    %73 = arith.divf %71, %72 : vector<8x64xf32>
    %74 = vector.extract_strided_slice %54 {offsets = [0, 128], sizes = [8, 64], strides = [1, 1]} : vector<8x192xf32> to vector<8x64xf32>
    %75 = vector.extract_strided_slice %57 {offsets = [0, 128], sizes = [8, 64], strides = [1, 1]} : vector<8x192xf32> to vector<8x64xf32>
    %c0_28 = arith.constant 0 : index
    %c0_29 = arith.constant 0 : index
    %76 = vector.load %arg10[%c0_28, %c0_29] : memref<1x64xf32, #tpu.memory_space<vmem>>, vector<1x64xf32>
    %77 = vector.broadcast %76 : vector<1x64xf32> to vector<8x64xf32>
    %78 = arith.addf %75, %77 : vector<8x64xf32>
    %79 = arith.mulf %65, %78 : vector<8x64xf32>
    %80 = arith.addf %74, %79 : vector<8x64xf32>
    %81 = math.tanh %80 : vector<8x64xf32>
    %cst_30 = arith.constant 1.000000e+00 : f32
    %82 = vector.broadcast %cst_30 : f32 to vector<8x64xf32>
    %83 = arith.subf %82, %73 : vector<8x64xf32>
    %84 = arith.mulf %83, %81 : vector<8x64xf32>
    %85 = arith.mulf %73, %48 : vector<8x64xf32>
    %86 = arith.addf %84, %85 : vector<8x64xf32>
    %87 = arith.truncf %86 : vector<8x64xf32> to vector<8x64xbf16>
    %c0_31 = arith.constant 0 : index
    %c0_32 = arith.constant 0 : index
    %88 = vector.load %arg11[%c0_31, %c0_32] : memref<64x128xbf16, #tpu.memory_space<vmem>>, vector<64x128xbf16>
    %cst_33 = arith.constant dense<0.000000e+00> : vector<8x128xf32>
    %89 = tpu.matmul %87, %88, %cst_33 {dimension_numbers = #tpu.dot_dimension_numbers<[1], [0], [0], [1], [0, 0, 1, 1], [], []>} : vector<8x64xbf16>, vector<64x128xbf16>, vector<8x128xf32> -> vector<8x128xf32>
    %c0_34 = arith.constant 0 : index
    %c0_35 = arith.constant 0 : index
    %90 = vector.load %arg12[%c0_34, %c0_35] : memref<1x128xf32, #tpu.memory_space<vmem>>, vector<1x128xf32>
    %91 = vector.broadcast %90 : vector<1x128xf32> to vector<8x128xf32>
    %92 = arith.addf %89, %91 : vector<8x128xf32>
    %c0_36 = arith.constant 0 : index
    %c0_37 = arith.constant 0 : index
    %93 = vector.load %arg13[%c0_36, %c0_37] : memref<8x128xf32, #tpu.memory_space<vmem>>, vector<8x128xf32>
    tpu.vector_store %arg13[%c0_36, %c0_37], %92 {strides = array<i32>} : memref<8x128xf32, #tpu.memory_space<vmem>>, vector<8x128xf32>,
    %94 = tpu.concatenate %47, %86 in 1 : vector<8x64xf32>, vector<8x64xf32> -> vector<8x128xf32>
    %c0_38 = arith.constant 0 : index
    %c0_39 = arith.constant 0 : index
    %95 = vector.load %arg14[%c0_38, %c0_39] : memref<8x128xf32, #tpu.memory_space<vmem>>, vector<8x128xf32>
    tpu.vector_store %arg14[%c0_38, %c0_39], %94 {strides = array<i32>} : memref<8x128xf32, #tpu.memory_space<vmem>>, vector<8x128xf32>,
    return
  }
}

</mosaic_0001>

<bundles_post_ra>
// kernel: decoder_forward.1
= control target key start
LH: loop header
LB: loop body
LE: loop exit
PB: predicated region body
PF: predicated region fallthrough
CT: control target
= control target key end

     0   :  { %20 = vsyncpa [#allocation3], 0  ;;  %s1295_s0 = inlined_call_operand.vmem [shape: s32[8,1], index: 0, kind: input, shape index: {}]   ;;  %s1296_s1 = inlined_call_operand.vmem [shape: f32[8,128], index: 1, kind: input, shape index: {}, may-alias: {1,14}]   ;;  %s1297_s2 = inlined_call_operand.hbm [shape: f32[16,32], index: 2, kind: input, shape index: {}]   ;;  %s1298_s3 = inlined_call_operand.vmem [shape: bf16[32,192], index: 3, kind: input, shape index: {}]   ;;  %s1299_s4 = inlined_call_operand.hbm [shape: bf16[64,192], index: 4, kind: input, shape index: {}]   ;;  %s1300_s5 = inlined_call_operand.hbm [shape: f32[1,192], index: 5, kind: input, shape index: {}]   ;;  %s1301_s6 = inlined_call_operand.vmem [shape: f32[1,64], index: 6, kind: input, shape index: {}]   ;;  %s1302_s7 = inlined_call_operand.hbm [shape: bf16[64,192], index: 7, kind: input, shape index: {}]   ;;  %s1303_s8 = inlined_call_operand.hbm [shape: bf16[64,192], index: 8, kind: input, shape index: {}]   ;;  %s1304_s9 = inlined_call_operand.hbm [shape: f32[1,192], index: 9, kind: input, shape index: {}]   ;;  %s1305_s10 = inlined_call_operand.hbm [shape: f32[1,64], index: 10, kind: input, shape index: {}]   ;;  %s1306_s11 = inlined_call_operand.hbm [shape: bf16[64,128], index: 11, kind: input, shape index: {}]   ;;  %s1307_s12 = inlined_call_operand.vmem [shape: f32[1,128], index: 12, kind: input, shape index: {}]   ;;  %s1308_s13 = inlined_call_operand.vmem [shape: f32[8,128], index: 13, kind: output, shape index: {0}]   ;;  %s1309_s14 = inlined_call_operand.vmem [shape: f32[8,128], index: 14, kind: output, shape index: {1}, may-alias: {1,14}]  }
   0x1   :  { %21 = vsyncpa [#allocation5], 0 }
   0x2   :  { %22 = vsyncpa [#allocation8], 0 }
   0x3   :  { %23 = vsyncpa [#allocation11], 0 }
   0x4   :  { %24 = vsyncpa [#allocation14], 0  ;;  %s1092_s29 = smov [#allocation4]   ;;  %s1093_s15 = smov [#allocation7]  }
   0x5   :  { %s48_s30 = sshll.u32 %s1092_s29, 4  ;;  %s72_s16 = sshll.u32 %s1093_s15, 4  ;;  %s49_s30 = int_to_ptr.vmem [resolvable:$true] %s48_s30  ;;  %s73_s16 = int_to_ptr.vmem [resolvable:$true] %s72_s16 }
   0x6   :  { %s930_s17 = scalar_lea.vmem %s49_s30, 1024  ;;  %p935_p1 = scmp.lt.s32.totalorder %s49_s30, %s49_s30 }
   0x7   :  { %p931_p0 = scmp.ne.s32.totalorder %s49_s30, %s930_s17  ;;  %p936_p2 = scmp.lt.s32.totalorder %s930_s17, %s930_s17 }
   0x9   :  { %p937_p3 = por %p936_p2, %p935_p1 }
   0xb   :  { %p938_p4 = pnand %p937_p3, %p931_p0 }
   0xd   :  { %941 = shalt.err (!%p938_p4)
}
   0xe   :  { %s1094_s18 = smov 128   ;;  %s1095_s19 = smov 8  }
   0xf   :  { %54 = dma.hbm_to_vmem [thread:$0]  %s1299_s4, 1024, %s49_s30, [#allocation5], %s1094_s18, %s1094_s18, %s1095_s19  }
  0x10   :  { %s950_s22 = scalar_lea.vmem %s73_s16, 1024  ;;  %p955_p6 = scmp.lt.s32.totalorder %s73_s16, %s73_s16 }
  0x11   :  { %p951_p5 = scmp.ne.s32.totalorder %s73_s16, %s950_s22  ;;  %p956_p7 = scmp.lt.s32.totalorder %s950_s22, %s950_s22 }
  0x13   :  { %p957_p8 = por %p956_p7, %p955_p6 }
  0x15   :  { %p958_p9 = pnand %p957_p8, %p951_p5 }
  0x17   :  { %961 = shalt.err (!%p958_p9)
}
  0x18   :  { %78 = dma.hbm_to_vmem [thread:$0]  %s1302_s7, 1024, %s73_s16, [#allocation8], %s1094_s18, %s1094_s18, %s1095_s19  }
  0x19   :  { %s1096_s25 = smov [#allocation10]   ;;  %s1097_s27 = smov [#allocation2]  }
  0x1a   :  { %s97_s26 = sshll.u32 %s1096_s25, 4  ;;  %s34_s28 = sshll.u32 %s1097_s27, 4  ;;  %s98_s26 = int_to_ptr.vmem [resolvable:$true] %s97_s26  ;;  %s35_s28 = int_to_ptr.vmem [resolvable:$true] %s34_s28 }
  0x1b   :  { %s970_s4 = scalar_lea.vmem %s98_s26, 32  ;;  %p975_p11 = scmp.lt.s32.totalorder %s98_s26, %s98_s26 }
  0x1c   :  { %p971_p10 = scmp.ne.s32.totalorder %s98_s26, %s970_s4  ;;  %p976_p12 = scmp.lt.s32.totalorder %s970_s4, %s970_s4 }
  0x1e   :  { %p977_p13 = por %p976_p12, %p975_p11 }
  0x20   :  { %p978_p0 = pnand %p977_p13, %p971_p10 }
  0x22   :  { %981 = shalt.err (!%p978_p0)
}
  0x23   :  { %100 = dma.hbm_to_vmem [thread:$0]  %s1304_s9, 32, %s98_s26, [#allocation11]  }
  0x24   :  { %s990_s15 = scalar_lea.vmem %s35_s28, 256  ;;  %p995_p2 = scmp.lt.s32.totalorder %s35_s28, %s35_s28 }
  0x25   :  { %p991_p1 = scmp.ne.s32.totalorder %s35_s28, %s990_s15  ;;  %p996_p3 = scmp.lt.s32.totalorder %s990_s15, %s990_s15 }
  0x27   :  { %p997_p4 = por %p996_p3, %p995_p2 }
  0x29   :  { %p998_p5 = pnand %p997_p4, %p991_p1 }
  0x2b   :  { %1001 = shalt.err (!%p998_p5)
}
  0x2c   :  { %40 = dma.hbm_to_vmem [thread:$0]  %s1297_s2, 256, %s35_s28, [#allocation3], %s1094_s18, %s1094_s18, %s1095_s19  }
  0x2d   :  { %s1098_s17 = smov [#allocation6]   ;;  %s1099_s21 = smov [#allocation9]  }
  0x2e   :  { %s61_s20 = sshll.u32 %s1098_s17, 4  ;;  %s84_s22 = sshll.u32 %s1099_s21, 4  ;;  %s62_s20 = int_to_ptr.vmem [resolvable:$true] %s61_s20  ;;  %s85_s22 = int_to_ptr.vmem [resolvable:$true] %s84_s22 }
  0x2f   :  { %s1010_s9 = scalar_lea.vmem %s62_s20, 32  ;;  %p1015_p7 = scmp.lt.s32.totalorder %s62_s20, %s62_s20 }
  0x30   :  { %p1011_p6 = scmp.ne.s32.totalorder %s62_s20, %s1010_s9  ;;  %p1016_p8 = scmp.lt.s32.totalorder %s1010_s9, %s1010_s9 }
  0x32   :  { %p1017_p9 = por %p1016_p8, %p1015_p7 }
  0x34   :  { %p1018_p10 = pnand %p1017_p9, %p1011_p6 }
  0x36   :  { %1021 = shalt.err (!%p1018_p10)
}
  0x37   :  { %64 = dma.hbm_to_vmem [thread:$0]  %s1300_s5, 32, %s62_s20, [#allocation5]  }
  0x38   :  { %s1030_s25 = scalar_lea.vmem %s85_s22, 1024  ;;  %p1035_p12 = scmp.lt.s32.totalorder %s85_s22, %s85_s22 }
  0x39   :  { %p1031_p11 = scmp.ne.s32.totalorder %s85_s22, %s1030_s25  ;;  %p1036_p13 = scmp.lt.s32.totalorder %s1030_s25, %s1030_s25 }
  0x3b   :  { %p1037_p0 = por %p1036_p13, %p1035_p12 }
  0x3d   :  { %p1038_p1 = pnand %p1037_p0, %p1031_p11 }
  0x3f   :  { %1041 = shalt.err (!%p1038_p1)
}
  0x40   :  { %90 = dma.hbm_to_vmem [thread:$0]  %s1303_s8, 1024, %s85_s22, [#allocation8], %s1094_s18, %s1094_s18, %s1095_s19  }
  0x41   :  { %s1100_s27 = smov [#allocation12]   ;;  %s1101_s4 = smov [#allocation13]  }
  0x42   :  { %s107_s28 = sshll.u32 %s1100_s27, 4  ;;  %s116_s29 = sshll.u32 %s1101_s4, 4  ;;  %s108_s28 = int_to_ptr.vmem [resolvable:$true] %s107_s28  ;;  %s117_s29 = int_to_ptr.vmem [resolvable:$true] %s116_s29 }
  0x43   :  { %s1050_s5 = scalar_lea.vmem %s108_s28, 16  ;;  %s1054_s30 = scalar_lea.vmem %s108_s28, 32 }
  0x44   :  { %p1051_p2 = scmp.ne.s32.totalorder %s108_s28, %s1050_s5  ;;  %p1055_p3 = scmp.lt.s32.totalorder %s108_s28, %s108_s28 }
  0x45   :  { %p1056_p4 = scmp.lt.s32.totalorder %s1054_s30, %s1050_s5 }
  0x47   :  { %p1057_p5 = por %p1056_p4, %p1055_p3 }
  0x49   :  { %p1058_p6 = pnand %p1057_p5, %p1051_p2 }
  0x4b   :  { %1061 = shalt.err (!%p1058_p6)
}
  0x4c   :  { %110 = dma.hbm_to_vmem [thread:$0]  %s1305_s10, 16, %s108_s28, [#allocation11]  }
  0x4d   :  { %s1070_s16 = scalar_lea.vmem %s117_s29, 512  ;;  %p1075_p8 = scmp.lt.s32.totalorder %s117_s29, %s117_s29 }
  0x4e   :  { %p1071_p7 = scmp.ne.s32.totalorder %s117_s29, %s1070_s16  ;;  %p1076_p9 = scmp.lt.s32.totalorder %s1070_s16, %s1070_s16 }
  0x50   :  { %p1077_p10 = por %p1076_p9, %p1075_p8 }
  0x52   :  { %p1078_p11 = pnand %p1077_p10, %p1071_p7 }
  0x54   :  { %1081 = shalt.err (!%p1078_p11)
}
  0x55   :  { %s1102_s8 = smov 64   ;;  %s1103_s18 = smov 4  }
  0x56   :  { %122 = dma.hbm_to_vmem [thread:$0]  %s1306_s11, 512, %s117_s29, [#allocation14], %s1102_s8, %s1102_s8, %s1103_s18  }
  0x57   :  { %1082 = dma.done.wait [#allocation3], 256  }
  0x58   :  { %1083 = vsyncadd [#allocation3], 4294967040 }
  0x59   :  { %1084 = dma.done.wait [#allocation5], 1056  }
  0x5a   :  { %1085 = vsyncadd [#allocation5], 4294966240 }
  0x5b   :  { %1086 = dma.done.wait [#allocation8], 2048  }
  0x5c   :  { %1087 = vsyncadd [#allocation8], 4294965248 }
  0x5d   :  { %1088 = dma.done.wait [#allocation11], 48  }
  0x5e   :  { %1089 = vsyncadd [#allocation11], 4294967248 }
  0x5f   :  { %1090 = dma.done.wait [#allocation14], 512  }
  0x60   :  { %1091 = vsyncadd [#allocation14], 4294966784  ;;  %v1104_v0 = vmov 0   ;;  %v1105_v1 = vmov 0.0   ;;  %vm1106_vm0 = vmmov 0   ;;  %v150_v2 = vld [vmem:[%s1295_s0] sm:$0xff]  ;;  %v151_v10 = vlaneseq }
  0x61   :  { %863 = vset.pattern.permute.xlu0 %v1104_v0  ;;  %829 = vmatprep.subr.mxu0 %v1105_v1  ;;  %v160_v3 = vld [vmem:[#allocation2 + $0x8] sm:$0xff]  ;;  %v159_v4 = vld [vmem:[#allocation2] sm:$0xff]  ;;  %v873_v6 = vld [vmem:[%s1298_s3 + $0x14] ss:$8 sps:$4 sm:$0xff]   ;;  %vm161_vm1 = vcmask 130048   ;;  %vm367_vm3 = vcmask 523264  }
  0x62   :  { %309 = vmatprep.mubr.bf16.mxu1 %v1104_v0  ;;  %833 = vmatprep.mubr.msk.f32.mxu0 %vm1106_vm0, %v1105_v1  ;;  %v866_v5 = vld [vmem:[#allocation4 + $0x34] ss:$8 sps:$4 sm:$0xff]   ;;  %v878_v7 = vld [vmem:[%s1298_s3 + $0x10] ss:$8 sps:$4 sm:$0xff]   ;;  %v152_v11 = vand.u32 127, %v151_v10  ;;  %vm273_vm4 = vcmask 261120  }
  0x63   :  { %154 = vperm.xlu0 %863, %v150_v2   ;;  %830 = vmatpush3.msra.mxu0 %v160_v3  ;;  %v879_v8 = vld [vmem:[%s1298_s3 + $0x4] ss:$8 sps:$4 sm:$0xff]   ;;  %v864_v13 = vld [vmem:[#allocation4 + $0x30] ss:$8 sps:$4 sm:$0xff]   ;;  %v869_v14 = vld [vmem:[#allocation4 + $0x24] ss:$8 sps:$4 sm:$0xff]  }
  0x64   :  { %831 = vmatprep.subr.mxu0 %v1105_v1  ;;  %289 = vmatprep.subr.bf16.mxu1 %v873_v6  ;;  %v1239_v9 = vld [vmem:[%s1296_s1] sm:$0xff]  ;;  %v867_v16 = vld [vmem:[#allocation4 + $0x20] ss:$8 sps:$4 sm:$0xff]   ;;  %v877_v19 = vld [vmem:[#allocation4 + $0x4] ss:$8 sps:$4 sm:$0xff]   ;;  %v1253_v30 = vshrl.u32 %v151_v10, 7 }
  0x65   :  { %832 = vmatpush3.msra.mxu0 %v159_v4  ;;  %290 = vmatpush1.bf16.msra.mxu1 %v878_v7  ;;  %v872_v17 = vld [vmem:[#allocation4 + $0x14] ss:$8 sps:$4 sm:$0xff]   ;;  %v870_v18 = vld [vmem:[#allocation4 + $0x10] ss:$8 sps:$4 sm:$0xff]   ;;  %v875_v20 = vld [vmem:[#allocation4] ss:$8 sps:$4 sm:$0xff]   ;;  %v1246_v21 = vpack.c.bf16 %v1239_v9, %v1239_v9 }
  0x66   :  { %379 = vmatprep.subr.bf16.mxu0 %v866_v5  ;;  %437 = vrot.lane.b32.xlu1 %v1239_v9, %s1102_s8  ;;  %v881_v22 = vld [vmem:[%s1298_s3] ss:$8 sps:$4 sm:$0xff]   ;;  %v245_v31 = vsub.s32 0, %v1253_v30  ;;  %v241_v32 = vld [vmem:[#allocation6] sm:$0x3]  ;;  %v249_v43 = vsub.s32 1, %v1253_v30 }
  0x67   :  { %291 = vmatprep.subr.bf16.mxu1 %v879_v8  ;;  %v794_v44 = vld [vmem:[%s1301_s6] ss:$0 sm:$0xff]  ;;  %v882_v51 = vld [vmem:[#allocation9 + $0x30] ss:$8 sps:$4 sm:$0xff]   ;;  %v884_v52 = vld [vmem:[#allocation9 + $0x34] ss:$8 sps:$4 sm:$0xff]  }
  0x68   :  { %v246_v33 = vrot.slane %v241_v32, %v245_v31  ;;  %v250_v45 = vrot.slane %v241_v32, %v249_v43  ;;  %v885_v53 = vld [vmem:[#allocation7 + $0x30] ss:$8 sps:$4 sm:$0xff]   ;;  %v887_v54 = vld [vmem:[#allocation7 + $0x34] ss:$8 sps:$4 sm:$0xff]   ;;  %v890_v55 = vld [vmem:[#allocation9 + $0x24] ss:$8 sps:$4 sm:$0xff]  }
  0x69   :  { %292 = vmatpush1.bf16.msra.mxu1 %v881_v22  ;;  %v893_v56 = vld [vmem:[#allocation7 + $0x24] ss:$8 sps:$4 sm:$0xff]   ;;  %v888_v57 = vld [vmem:[#allocation9 + $0x20] ss:$8 sps:$4 sm:$0xff]   ;;  %v896_v59 = vld [vmem:[#allocation9 + $0x14] ss:$8 sps:$4 sm:$0xff]  }
  0x6a   :  { %517 = vmatprep.subr.bf16.mxu1 %v887_v54  ;;  %v891_v58 = vld [vmem:[#allocation7 + $0x20] ss:$8 sps:$4 sm:$0xff]   ;;  %v899_v60 = vld [vmem:[#allocation7 + $0x14] ss:$8 sps:$4 sm:$0xff]   ;;  %v894_v62 = vld [vmem:[#allocation9 + $0x10] ss:$8 sps:$4 sm:$0xff]  }
  0x6b   :  { %v897_v63 = vld [vmem:[#allocation7 + $0x10] ss:$8 sps:$4 sm:$0xff]   ;;  %v905_v2 = vld [vmem:[#allocation7 + $0x4] ss:$8 sps:$4 sm:$0xff]   ;;  %v900_v3 = vld [vmem:[#allocation9] ss:$8 sps:$4 sm:$0xff]  }
  0x6c   :  { %v903_v4 = vld [vmem:[#allocation7] ss:$8 sps:$4 sm:$0xff]  }
  0x6d   :  { %v814_v32 = vld [vmem:[#allocation12] ss:$0 sm:$0xff]  ;;  %v909_v30 = vld [vmem:[#allocation13] sm:$0xff]  }
  0xd8   :  { %v438_v5 = vpop.permute.xlu1 %437 }
  0xde   :  { %v155_v12 = vpop.permute.xlu0 %154 }
  0xdf   :  { %vm156_vm2 = vcmp.eq.s32.totalorder %v152_v11, %v155_v12 }
  0xe0   :  { %v777_v15 = vsel %vm156_vm2, 1.0, %v1105_v1 }
  0xe1   :  { %834 = vmatmul.mubr.msk.f32.vlgmr.msra.gmra.mxu0 %vm161_vm1, %v777_v15 }
  0xe2   :  { %380 = vmatpush1.bf16.msra.mxu0 %v864_v13  ;;  %403 = vmatprep.mubr.bf16.mxu0 %v1104_v0 }
  0xe3   :  { %381 = vmatprep.subr.bf16.mxu0 %v869_v14 }
  0xe6   :  { %382 = vmatpush1.bf16.msra.mxu0 %v867_v16 }
  0xe7   :  { %383 = vmatprep.subr.bf16.mxu0 %v872_v17 }
  0xea   :  { %384 = vmatpush1.bf16.msra.mxu0 %v870_v18 }
  0xeb   :  { %385 = vmatprep.subr.bf16.mxu0 %v877_v19  ;;  %v451_v19 = vld [vmem:[#allocation10] sm:$0x3] }
  0xee   :  { %386 = vmatpush1.bf16.msra.mxu0 %v875_v20  ;;  %v456_v20 = vrot.slane %v451_v19, %v245_v31 }
  0xef   :  { %612 = vmatprep.subr.bf16.mxu0 %v884_v52 }
  0xf1   :  { %792 = vmatmul.mubr.msk.bf16.vlgmr.msra.gmra.mxu0 %vm367_vm3, %v1246_v21 }
  0xf2   :  { %636 = vmatprep.mubr.bf16.mxu0 %v1104_v0  ;;  %613 = vmatpush1.bf16.msra.mxu0 %v882_v51 }
  0xf3   :  { %614 = vmatprep.subr.bf16.mxu0 %v890_v55 }
  0xf6   :  { %615 = vmatpush1.bf16.msra.mxu0 %v888_v57 }
  0xf7   :  { %616 = vmatprep.subr.bf16.mxu0 %v896_v59 }
  0xfa   :  { %617 = vmatpush1.bf16.msra.mxu0 %v894_v62 }
 0x1a1   :  { %v231_v23 = vpop.f32.mrf.mxu0 }
 0x1a2   :  { %v236_v24 = vpack.c.bf16 %v231_v23, %v231_v23 }
 0x1a3   :  { %v835_v25 = vpop.f32.mrf.mxu0 }
 0x1a4   :  { %783 = vmatmul.mubr.msk.bf16.vlgmr.msra.gmra.mxu1 %vm273_vm4, %v236_v24 }
 0x1a5   :  { %541 = vmatprep.mubr.bf16.mxu1 %v1104_v0  ;;  %518 = vmatpush1.bf16.msra.mxu1 %v885_v53  ;;  %v902_v0 = vld [vmem:[#allocation9 + $0x4] ss:$8 sps:$4 sm:$0xff]  }
 0x1a6   :  { %519 = vmatprep.subr.bf16.mxu1 %v893_v56  ;;  %618 = vmatprep.subr.bf16.mxu0 %v902_v0 }
 0x1a7   :  { %619 = vmatpush1.bf16.msra.mxu0 %v900_v3 }
 0x1a9   :  { %520 = vmatpush1.bf16.msra.mxu1 %v891_v58 }
 0x1aa   :  { %521 = vmatprep.subr.bf16.mxu1 %v899_v60 }
 0x1ad   :  { %522 = vmatpush1.bf16.msra.mxu1 %v897_v63 }
 0x1ae   :  { %523 = vmatprep.subr.bf16.mxu1 %v905_v2 }
 0x1b1   :  { %v405_v26 = vpop.f32.mrf.mxu0  ;;  %524 = vmatpush1.bf16.msra.mxu1 %v903_v4 }
 0x1b2   :  { %836 = vmatprep.subr.bf16.mxu1 %v1105_v1 }
 0x1b3   :  { %v407_v27 = vpop.f32.mrf.mxu0 }
 0x1b4   :  { %v426_v46 = vadd.f32 %v794_v44, %v407_v27 }
 0x1b5   :  { %v409_v28 = vpop.f32.mrf.mxu0 }
 0x1b7   :  { %v410_v29 = vpop.f32.mrf.mxu0 }
 0x264   :  { %v311_v34 = vpop.f32.mrf.mxu1 }
 0x265   :  { %v312_v35 = vadd.f32 %v311_v34, %v246_v33  ;;  %v460_v33 = vrot.slane %v451_v19, %v249_v43 }
 0x266   :  { %v313_v36 = vpop.f32.mrf.mxu1 }
 0x267   :  { %v412_v37 = vadd.f32 %v405_v26, %v312_v35  ;;  %v314_v48 = vadd.f32 %v313_v36, %v250_v45 }
 0x268   :  { %v315_v38 = vpop.f32.mrf.mxu1 }
 0x269   :  { %v793_v39 = vmul.f32 -1.442695, %v412_v37  ;;  %v906_v38 = vld [vmem:[#allocation13 + $0x18] sm:$0xff]  }
 0x26a   :  { %v316_v40 = vpop.f32.mrf.mxu1 }
 0x26b   :  { %910 = vpow2.f32 %v793_v39  ;;  %v907_v39 = vld [vmem:[#allocation13 + $0x10] sm:$0xff]  }
 0x278   :  { %v911_v41 = vpop.eup %910 }
 0x279   :  { %v416_v42 = vadd.f32 1.0, %v911_v41  ;;  %v908_v41 = vld [vmem:[#allocation13 + $0x8] sm:$0xff]  }
 0x27b   :  { %912 = vrcp.f32 %v416_v42 }
 0x288   :  { %v913_v47 = vpop.eup %912 }
 0x289   :  { %v427_v49 = vmul.f32 %v913_v47, %v426_v46  ;;  %v430_v6 = vsub.f32 1.0, %v913_v47  ;;  %v440_v8 = vmul.f32 %v913_v47, %v438_v5 }
 0x28b   :  { %v428_v50 = vadd.f32 %v427_v49, %v314_v48 }
 0x28d   :  { %914 = vtanh.f32 %v428_v50 }
 0x29a   :  { %v915_v61 = vpop.eup %914 }
 0x29b   :  { %432 = vrot.lane.b32.xlu0 %v915_v61, %s1102_s8 }
 0x29f   :  { %559 = vrot.lane.b32.xlu0 %v1246_v21, %s1102_s8 }
 0x30d   :  { %v433_v7 = vpop.permute.xlu0 %432 }
 0x30e   :  { %v435_v10 = vmul.f32 %v433_v7, %v430_v6 }
 0x310   :  { %v441_v11 = vadd.f32 %v440_v8, %v435_v10 }
 0x311   :  { %v560_v12 = vpop.permute.xlu0 %559 }
 0x312   :  { %v442_v13 = vpack.c.bf16 %v441_v11, %v441_v11  ;;  %812 = vmatmul.mubr.msk.bf16.vlgmr.msra.gmra.mxu0 %vm367_vm3, %v560_v12 }
 0x314   :  { %464 = vrot.lane.b32.xlu1 %v442_v13, %s1102_s8 }
 0x386   :  { %v465_v14 = vpop.permute.xlu1 %464 }
 0x387   :  { %803 = vmatmul.mubr.msk.bf16.vlgmr.msra.gmra.mxu1 %vm367_vm3, %v465_v14 }
 0x388   :  { %844 = vmatprep.mubr.msk.bf16.mxu1 %vm1106_vm0, %v1105_v1  ;;  %837 = vmatpush3.bf16.msra.mxu1 %v906_v38 }
 0x389   :  { %838 = vmatprep.subr.bf16.mxu1 %v1105_v1 }
 0x38c   :  { %839 = vmatpush3.bf16.msra.mxu1 %v907_v39 }
 0x38d   :  { %840 = vmatprep.subr.bf16.mxu1 %v1105_v1 }
 0x390   :  { %841 = vmatpush3.bf16.msra.mxu1 %v908_v41 }
 0x391   :  { %842 = vmatprep.subr.bf16.mxu1 %v1105_v1  ;;  %v815_v1 = vld [vmem:[%s1307_s12] ss:$0 sm:$0xff] }
 0x394   :  { %843 = vmatpush3.bf16.msra.mxu1 %v909_v30 }
 0x3d2   :  { %v638_v15 = vpop.f32.mrf.mxu0 }
 0x3d4   :  { %v640_v16 = vpop.f32.mrf.mxu0 }
 0x3d5   :  { %v659_v34 = vadd.f32 %v814_v32, %v640_v16 }
 0x3d6   :  { %v642_v17 = vpop.f32.mrf.mxu0 }
 0x3d8   :  { %v643_v18 = vpop.f32.mrf.mxu0 }
 0x447   :  { %v543_v21 = vpop.f32.mrf.mxu1 }
 0x448   :  { %v544_v22 = vadd.f32 %v543_v21, %v456_v20 }
 0x449   :  { %v545_v23 = vpop.f32.mrf.mxu1 }
 0x44a   :  { %v645_v24 = vadd.f32 %v638_v15, %v544_v22  ;;  %v546_v36 = vadd.f32 %v545_v23, %v460_v33 }
 0x44b   :  { %v547_v25 = vpop.f32.mrf.mxu1 }
 0x44c   :  { %v813_v26 = vmul.f32 -1.442695, %v645_v24 }
 0x44d   :  { %v548_v27 = vpop.f32.mrf.mxu1 }
 0x44e   :  { %916 = vpow2.f32 %v813_v26 }
 0x45b   :  { %v917_v28 = vpop.eup %916 }
 0x45c   :  { %v649_v29 = vadd.f32 1.0, %v917_v28 }
 0x45e   :  { %918 = vrcp.f32 %v649_v29 }
 0x46b   :  { %v919_v35 = vpop.eup %918 }
 0x46c   :  { %v660_v37 = vmul.f32 %v919_v35, %v659_v34  ;;  %v663_v42 = vsub.f32 1.0, %v919_v35  ;;  %v669_v44 = vmul.f32 %v919_v35, %v1239_v9 }
 0x46e   :  { %v661_v31 = vadd.f32 %v660_v37, %v546_v36 }
 0x470   :  { %920 = vtanh.f32 %v661_v31 }
 0x47d   :  { %v921_v40 = vpop.eup %920 }
 0x47e   :  { %665 = vrot.lane.b32.xlu1 %v921_v40, %s1102_s8 }
 0x482   :  { %759 = vrot.lane.b32.xlu1 %v441_v11, %s1102_s8 }
 0x4f0   :  { %v666_v43 = vpop.permute.xlu1 %665 }
 0x4f1   :  { %v668_v45 = vmul.f32 %v666_v43, %v663_v42 }
 0x4f3   :  { %v670_v46 = vadd.f32 %v669_v44, %v668_v45 }
 0x4f4   :  { %v760_v47 = vpop.permute.xlu1 %759 }
 0x4f5   :  { %v762_v48 = vsel %vm367_vm3, %v760_v47, %v670_v46  ;;  %v671_v49 = vpack.c.bf16 %v670_v46, %v670_v46 }
 0x4f6   :  { %763 = vst [vmem:[%s1309_s14] sm:$0xff] %v762_v48 }
 0x4f7   :  { %688 = vrot.lane.b32.xlu0 %v671_v49, %s1102_s8 }
 0x569   :  { %v689_v50 = vpop.permute.xlu0 %688 }
 0x56a   :  { %845 = vmatmul.mubr.msk.bf16.vlgmr.msra.gmra.mxu1 %vm367_vm3, %v689_v50 }
 0x62a   :  { %v751_v9 = vpop.f32.mrf.mxu1 }
 0x62b   :  { %v752_v51 = vadd.f32 %v815_v1, %v751_v9 }
 0x62c   :  { %v846_v52 = vpop.f32.mrf.mxu1 }
 0x62d   :  { %757 = vst [vmem:[%s1308_s13] sm:$0xff] %v752_v51 }
 0x62e   :  { %v754_v53 = vpop.f32.mrf.mxu1 }
 0x630   :  { %v847_v54 = vpop.f32.mrf.mxu1 }
 0x631   :  { %772 = vsyncpa [#allocation3], 1 }
 0x632   :  { %773 = vsyncpa [#allocation5], 1 }
 0x633   :  { %774 = vsyncpa [#allocation8], 1 }
 0x634   :  { %775 = vsyncpa [#allocation11], 1 }
 0x635   :  { %776 = vsyncpa [#allocation14], 1 }

</bundles_post_ra>
